<compile_context>
chip_gen: v6e
topology: v6e:2x2x1
jax: 0.10.0
libtpu: 0.0.40
codegen_flags: <defaults>
</compile_context>

<pallas_src>
import math

import jax
import jax.numpy as jnp
from jax.experimental import pallas as pl
from jax.experimental.pallas import tpu as pltpu

D_IN = 784
D_HID = 300          # logical hidden size (PyTorch)
D_OUT = 1


def _round_up(x, m):
    return ((x + m - 1) // m) * m


D_HID_P = _round_up(D_HID, 128)   # 384: padded hidden size used inside kernel


def _mlp_kernel(x_ref, w1_ref, b1_ref, w2_ref, b2_ref, w3_ref, b3_ref, o_ref):
    # x tile: (TB, 784) bf16; weights bf16; biases / w3 row / accum in f32.
    x = x_ref[...]

    # fc1 on the MXU (bf16 in, f32 acc); bias + ReLU on the VPU in f32.
    h1 = jnp.dot(x, w1_ref[...], preferred_element_type=jnp.float32)
    h1 = jnp.maximum(h1 + b1_ref[...], 0.0)                    # (TB, 384) f32

    # fc2: re-quantize activation to bf16 only for the MXU operand.
    h2 = jnp.dot(h1.astype(jnp.bfloat16), w2_ref[...],
                 preferred_element_type=jnp.float32)
    h2 = jnp.maximum(h2 + b2_ref[...], 0.0)                    # (TB, 384) f32

    # fc3 has a single output feature: VPU multiply + cross-lane reduction
    # (XLU) instead of an N=1 MXU matmul that would use 1/128 of the array.
    h3 = jnp.sum(h2 * w3_ref[...], axis=-1, keepdims=True)     # (TB, 1) f32

    o_ref[...] = (h3 + b3_ref[...]).astype(o_ref.dtype)        # (TB, 1)


def big_binarized_mnist_net(x, params, *, block_b=512):
    """Forward pass. x: (B, 784) float32 -> (B,) float32.

    params holds f32 weights with PyTorch-transposed layout: W is
    (in_features, out_features), b is (1, out_features).
    """
    w1, b1, w2, b2, w3, b3 = params
    B = x.shape[0]

    pad_h = D_HID_P - D_HID

    # Zero-pad hidden dim to 384 and cast matmul weights to bf16 for the MXU.
    w1p = jnp.pad(w1, ((0, 0), (0, pad_h))).astype(jnp.bfloat16)   # (784, 384)
    b1p = jnp.pad(b1, ((0, 0), (0, pad_h)))                        # (1, 384) f32
    w2p = jnp.pad(w2, ((0, pad_h), (0, pad_h))).astype(jnp.bfloat16)  # (384, 384)
    b2p = jnp.pad(b2, ((0, 0), (0, pad_h)))                        # (1, 384) f32
    # fc3 weight as a dense f32 row for the VPU reduction path.
    w3p = jnp.pad(w3.reshape(1, D_HID), ((0, 0), (0, pad_h)))      # (1, 384) f32
    b3p = b3.reshape(1, 1).astype(jnp.float32)                     # (1, 1)

    # Batch tiling: large tile to fill the MXU M dim; pad batch to a multiple.
    bb = _round_up(min(block_b, _round_up(B, 8)), 8)
    Bp = _round_up(B, bb)
    xb = x.astype(jnp.bfloat16)
    if Bp != B:
        xb = jnp.pad(xb, ((0, Bp - B), (0, 0)))
    grid = (Bp // bb,)

    flops = 2 * Bp * (D_IN * D_HID_P + D_HID_P * D_HID_P + D_HID_P)
    bytes_accessed = (
        xb.size * 2                                   # bf16 input
        + (w1p.size + w2p.size) * 2                   # bf16 weights
        + (b1p.size + b2p.size + w3p.size + b3p.size) * 4
        + Bp * 4                                      # f32 output
    )

    out = pl.pallas_call(
        _mlp_kernel,
        out_shape=jax.ShapeDtypeStruct((Bp, D_OUT), jnp.float32),
        grid_spec=pltpu.PrefetchScalarGridSpec(
            num_scalar_prefetch=0,
            grid=grid,
            in_specs=[
                pl.BlockSpec((bb, D_IN), lambda i: (i, 0)),        # x tile
                pl.BlockSpec((D_IN, D_HID_P), lambda i: (0, 0)),   # W1 (bf16)
                pl.BlockSpec((1, D_HID_P), lambda i: (0, 0)),      # b1
                pl.BlockSpec((D_HID_P, D_HID_P), lambda i: (0, 0)),# W2 (bf16)
                pl.BlockSpec((1, D_HID_P), lambda i: (0, 0)),      # b2
                pl.BlockSpec((1, D_HID_P), lambda i: (0, 0)),      # W3 row (f32)
                pl.BlockSpec((1, 1), lambda i: (0, 0)),            # b3
            ],
            out_specs=pl.BlockSpec((bb, D_OUT), lambda i: (i, 0)),
        ),
        compiler_params=pltpu.CompilerParams(
            dimension_semantics=("parallel",),
        ),
        cost_estimate=pl.CostEstimate(
            flops=flops, transcendentals=0, bytes_accessed=bytes_accessed),
    )(xb, w1p, b1p, w2p, b2p, w3p, b3p)

    # x.flatten() in the PyTorch module: (Bp, 1) -> (B,), dropping batch pad.
    return out.reshape(-1)[:B]


def init_params(key):
    """Deterministic init mimicking nn.Linear default (uniform ±1/sqrt(fan_in)).

    Weights are stored as (in_features, out_features); biases as (1, out)."""
    ks = jax.random.split(key, 6)

    def linear(kw, kb, fan_in, fan_out):
        bound = 1.0 / math.sqrt(fan_in)
        w = jax.random.uniform(kw, (fan_in, fan_out), jnp.float32, -bound, bound)
        b = jax.random.uniform(kb, (1, fan_out), jnp.float32, -bound, bound)
        return w, b

    w1, b1 = linear(ks[0], ks[1], D_IN, D_HID)
    w2, b2 = linear(ks[2], ks[3], D_HID, D_HID)
    w3, b3 = linear(ks[4], ks[5], D_HID, D_OUT)
    return (w1, b1, w2, b2, w3, b3)


def _reference(x, params):
    # Pure-JAX f32 reference of the PyTorch forward.
    w1, b1, w2, b2, w3, b3 = params
    h = jnp.maximum(x @ w1 + b1, 0.0)
    h = jnp.maximum(h @ w2 + b2, 0.0)
    return (h @ w3 + b3).reshape(-1)


if __name__ == "__main__":
    key = jax.random.PRNGKey(0)
    k_params, k_x = jax.random.split(key)

    params = init_params(k_params)

    B = 16  # small demo batch (not a multiple of the default tile; gets padded)
    x = jax.random.uniform(k_x, (B, D_IN), jnp.float32)  # binarized-MNIST-like

    y = big_binarized_mnist_net(x, params)
    y = jax.block_until_ready(y)

    y_ref = _reference(x, params)
    assert y.shape == (B,)
    # bf16 MXU operands -> compare against the f32 reference with a loose tol.
    assert jnp.allclose(y, y_ref, atol=3e-2, rtol=3e-2), "mismatch vs JAX reference"

    print("KERNEL_OK")
</pallas_src>

<mosaic_0001>
module attributes {stable_mosaic.version = 11 : i64} {
  func.func @_mlp_kernel(%arg0: i32, %arg1: memref<16x784xbf16, #tpu.memory_space<vmem>>, %arg2: memref<784x384xbf16, #tpu.memory_space<vmem>>, %arg3: memref<1x384xf32, #tpu.memory_space<vmem>>, %arg4: memref<384x384xbf16, #tpu.memory_space<vmem>>, %arg5: memref<1x384xf32, #tpu.memory_space<vmem>>, %arg6: memref<1x384xf32, #tpu.memory_space<vmem>>, %arg7: memref<1x1xf32, #tpu.memory_space<vmem>>, %arg8: memref<16x1xf32, #tpu.memory_space<vmem>>) attributes {dimension_semantics = [#tpu.dimension_semantics<parallel>], iteration_bounds = array<i64: 1>, scalar_prefetch = 0 : i64, scratch_operands = 0 : i64, tpu.core_type = #tpu.core_type<tc>, window_params = [{transform_indices = @transform_0, window_bounds = array<i64: 16, 784>}, {pipeline_mode = #tpu.pipeline_mode<synchronous>, transform_indices = @transform_1, window_bounds = array<i64: 784, 384>}, {pipeline_mode = #tpu.pipeline_mode<synchronous>, transform_indices = @transform_2, window_bounds = array<i64: 1, 384>}, {pipeline_mode = #tpu.pipeline_mode<synchronous>, transform_indices = @transform_3, window_bounds = array<i64: 384, 384>}, {pipeline_mode = #tpu.pipeline_mode<synchronous>, transform_indices = @transform_4, window_bounds = array<i64: 1, 384>}, {pipeline_mode = #tpu.pipeline_mode<synchronous>, transform_indices = @transform_5, window_bounds = array<i64: 1, 384>}, {pipeline_mode = #tpu.pipeline_mode<synchronous>, transform_indices = @transform_6, window_bounds = array<i64: 1, 1>}, {transform_indices = @transform_7, window_bounds = array<i64: 16, 1>}]} {
    %c0 = arith.constant 0 : index
    %c0_0 = arith.constant 0 : index
    %0 = vector.load %arg1[%c0, %c0_0] : memref<16x784xbf16, #tpu.memory_space<vmem>>, vector<16x784xbf16>
    %c0_1 = arith.constant 0 : index
    %c0_2 = arith.constant 0 : index
    %1 = vector.load %arg2[%c0_1, %c0_2] : memref<784x384xbf16, #tpu.memory_space<vmem>>, vector<784x384xbf16>
    %cst = arith.constant dense<0.000000e+00> : vector<16x384xf32>
    %2 = tpu.matmul %0, %1, %cst {dimension_numbers = #tpu.dot_dimension_numbers<[1], [0], [0], [1], [0, 0, 1, 1], [], []>} : vector<16x784xbf16>, vector<784x384xbf16>, vector<16x384xf32> -> vector<16x384xf32>
    %c0_3 = arith.constant 0 : index
    %c0_4 = arith.constant 0 : index
    %3 = vector.load %arg3[%c0_3, %c0_4] : memref<1x384xf32, #tpu.memory_space<vmem>>, vector<1x384xf32>
    %4 = vector.broadcast %3 : vector<1x384xf32> to vector<16x384xf32>
    %5 = arith.addf %2, %4 : vector<16x384xf32>
    %cst_5 = arith.constant 0.000000e+00 : f32
    %6 = vector.broadcast %cst_5 : f32 to vector<16x384xf32>
    %7 = arith.maximumf %5, %6 : vector<16x384xf32>
    %8 = arith.truncf %7 : vector<16x384xf32> to vector<16x384xbf16>
    %c0_6 = arith.constant 0 : index
    %c0_7 = arith.constant 0 : index
    %9 = vector.load %arg4[%c0_6, %c0_7] : memref<384x384xbf16, #tpu.memory_space<vmem>>, vector<384x384xbf16>
    %cst_8 = arith.constant dense<0.000000e+00> : vector<16x384xf32>
    %10 = tpu.matmul %8, %9, %cst_8 {dimension_numbers = #tpu.dot_dimension_numbers<[1], [0], [0], [1], [0, 0, 1, 1], [], []>} : vector<16x384xbf16>, vector<384x384xbf16>, vector<16x384xf32> -> vector<16x384xf32>
    %c0_9 = arith.constant 0 : index
    %c0_10 = arith.constant 0 : index
    %11 = vector.load %arg5[%c0_9, %c0_10] : memref<1x384xf32, #tpu.memory_space<vmem>>, vector<1x384xf32>
    %12 = vector.broadcast %11 : vector<1x384xf32> to vector<16x384xf32>
    %13 = arith.addf %10, %12 : vector<16x384xf32>
    %cst_11 = arith.constant 0.000000e+00 : f32
    %14 = vector.broadcast %cst_11 : f32 to vector<16x384xf32>
    %15 = arith.maximumf %13, %14 : vector<16x384xf32>
    %c0_12 = arith.constant 0 : index
    %c0_13 = arith.constant 0 : index
    %16 = vector.load %arg6[%c0_12, %c0_13] : memref<1x384xf32, #tpu.memory_space<vmem>>, vector<1x384xf32>
    %17 = vector.broadcast %16 : vector<1x384xf32> to vector<16x384xf32>
    %18 = arith.mulf %15, %17 : vector<16x384xf32>
    %cst_14 = arith.constant dense<0.000000e+00> : vector<16xf32>
    %19 = vector.multi_reduction <add>, %18, %cst_14 [1] : vector<16x384xf32> to vector<16xf32>
    %20 = vector.shape_cast %19 : vector<16xf32> to vector<16x1xf32>
    %c0_15 = arith.constant 0 : index
    %c0_16 = arith.constant 0 : index
    %21 = vector.load %arg7[%c0_15, %c0_16] : memref<1x1xf32, #tpu.memory_space<vmem>>, vector<1x1xf32>
    %22 = vector.broadcast %21 : vector<1x1xf32> to vector<16x1xf32>
    %23 = arith.addf %20, %22 : vector<16x1xf32>
    %c0_17 = arith.constant 0 : index
    %c0_18 = arith.constant 0 : index
    %24 = vector.load %arg8[%c0_17, %c0_18] : memref<16x1xf32, #tpu.memory_space<vmem>>, vector<16x1xf32>
    tpu.vector_store %arg8[%c0_17, %c0_18], %23 {strides = array<i32>} : memref<16x1xf32, #tpu.memory_space<vmem>>, vector<16x1xf32>,
    return
  }
  func.func @transform_0(%arg0: i32) -> (i32, i32) {
    %c0_i32 = arith.constant 0 : i32
    %c0_i32_0 = arith.constant 0 : i32
    return %arg0, %c0_i32 : i32, i32
  }
  func.func @transform_1(%arg0: i32) -> (i32, i32) {
    %c0_i32 = arith.constant 0 : i32
    %c0_i32_0 = arith.constant 0 : i32
    %c0_i32_1 = arith.constant 0 : i32
    return %c0_i32, %c0_i32_0 : i32, i32
  }
  func.func @transform_2(%arg0: i32) -> (i32, i32) {
    %c0_i32 = arith.constant 0 : i32
    %c0_i32_0 = arith.constant 0 : i32
    %c0_i32_1 = arith.constant 0 : i32
    return %c0_i32, %c0_i32_0 : i32, i32
  }
  func.func @transform_3(%arg0: i32) -> (i32, i32) {
    %c0_i32 = arith.constant 0 : i32
    %c0_i32_0 = arith.constant 0 : i32
    %c0_i32_1 = arith.constant 0 : i32
    return %c0_i32, %c0_i32_0 : i32, i32
  }
  func.func @transform_4(%arg0: i32) -> (i32, i32) {
    %c0_i32 = arith.constant 0 : i32
    %c0_i32_0 = arith.constant 0 : i32
    %c0_i32_1 = arith.constant 0 : i32
    return %c0_i32, %c0_i32_0 : i32, i32
  }
  func.func @transform_5(%arg0: i32) -> (i32, i32) {
    %c0_i32 = arith.constant 0 : i32
    %c0_i32_0 = arith.constant 0 : i32
    %c0_i32_1 = arith.constant 0 : i32
    return %c0_i32, %c0_i32_0 : i32, i32
  }
  func.func @transform_6(%arg0: i32) -> (i32, i32) {
    %c0_i32 = arith.constant 0 : i32
    %c0_i32_0 = arith.constant 0 : i32
    %c0_i32_1 = arith.constant 0 : i32
    return %c0_i32, %c0_i32_0 : i32, i32
  }
  func.func @transform_7(%arg0: i32) -> (i32, i32) {
    %c0_i32 = arith.constant 0 : i32
    %c0_i32_0 = arith.constant 0 : i32
    return %arg0, %c0_i32 : i32, i32
  }
}

</mosaic_0001>

<bundles_post_ra>
// kernel: tpu_custom_call.1
= control target key start
LH: loop header
LB: loop body
LE: loop exit
PB: predicated region body
PF: predicated region fallthrough
CT: control target
= control target key end

     0   :  { %s3052_s0 = inlined_call_operand.hbm [shape: bf16[16,784], index: 0, kind: input, shape index: {}]   ;;  %s3053_s1 = inlined_call_operand.hbm [shape: bf16[784,384], index: 1, kind: input, shape index: {}]   ;;  %s3054_s2 = inlined_call_operand.vmem [shape: f32[1,384], index: 2, kind: input, shape index: {}]   ;;  %s3055_s3 = inlined_call_operand.hbm [shape: bf16[384,384], index: 3, kind: input, shape index: {}]   ;;  %s3056_s4 = inlined_call_operand.vmem [shape: f32[1,384], index: 4, kind: input, shape index: {}]   ;;  %s3057_s5 = inlined_call_operand.vmem [shape: f32[1,384], index: 5, kind: input, shape index: {}]   ;;  %s3058_s6 = inlined_call_operand.<no memory space> [shape: f32[1,1], index: 6, kind: input, shape index: {}]   ;;  %s3059_s7 = inlined_call_operand.vmem [shape: f32[16,1], index: 7, kind: output, shape index: {}]  }
   0x1   :  { %v12_v0 = vstv %s3058_s6 }
   0x2   :  { %13 = vst [vmem:[#allocation2] sm:$0x1] %v12_v0 }
   0x3   :  { %14 = vsyncpa [#allocation4], 0 }
   0x4   :  { %15 = vsyncpa [#allocation6], 0  ;;  %s2909_s26 = smov [#allocation5]  }
   0x5   :  { %s33_s27 = sshll.u32 %s2909_s26, 4  ;;  %s34_s27 = int_to_ptr.vmem [resolvable:$true] %s33_s27 }
   0x6   :  { %s2853_s28 = scalar_lea.vmem %s34_s27, 18816  ;;  %p2858_p1 = scmp.lt.s32.totalorder %s34_s27, %s34_s27 }
   0x7   :  { %p2854_p0 = scmp.ne.s32.totalorder %s34_s27, %s2853_s28  ;;  %p2859_p2 = scmp.lt.s32.totalorder %s2853_s28, %s2853_s28 }
   0x9   :  { %p2860_p3 = por %p2859_p2, %p2858_p1 }
   0xb   :  { %p2861_p4 = pnand %p2860_p3, %p2854_p0 }
   0xd   :  { %2864 = shalt.err (!%p2861_p4)
}
   0xe   :  { %s2910_s29 = smov 192   ;;  %s2911_s30 = smov 12  }
   0xf   :  { %39 = dma.hbm_to_vmem [thread:$0]  %s3053_s1, 18816, %s34_s27, [#allocation6], %s2910_s29, %s2910_s29, %s2911_s30  }
  0x10   :  { %s2912_s6 = smov [#allocation3]  }
  0x11   :  { %s21_s10 = sshll.u32 %s2912_s6, 4  ;;  %s22_s10 = int_to_ptr.vmem [resolvable:$true] %s21_s10 }
  0x12   :  { %s2873_s11 = scalar_lea.vmem %s22_s10, 896  ;;  %p2878_p6 = scmp.lt.s32.totalorder %s22_s10, %s22_s10 }
  0x13   :  { %p2874_p5 = scmp.ne.s32.totalorder %s22_s10, %s2873_s11  ;;  %p2879_p7 = scmp.lt.s32.totalorder %s2873_s11, %s2873_s11 }
  0x15   :  { %p2880_p8 = por %p2879_p7, %p2878_p6 }
  0x17   :  { %p2881_p9 = pnand %p2880_p8, %p2874_p5 }
  0x19   :  { %2884 = shalt.err (!%p2881_p9)
}
  0x1a   :  { %s2913_s12 = smov 448   ;;  %s2914_s13 = smov 28  }
  0x1b   :  { %27 = dma.hbm_to_vmem [thread:$0]  %s3052_s0, 896, %s22_s10, [#allocation4], %s2913_s12, %s2913_s12, %s2914_s13  }
  0x1c   :  { %s2915_s16 = smov [#allocation7]  }
  0x1d   :  { %s47_s17 = sshll.u32 %s2915_s16, 4  ;;  %s48_s17 = int_to_ptr.vmem [resolvable:$true] %s47_s17 }
  0x1e   :  { %s2893_s1 = scalar_lea.vmem %s48_s17, 9216  ;;  %p2898_p11 = scmp.lt.s32.totalorder %s48_s17, %s48_s17 }
  0x1f   :  { %p2894_p10 = scmp.ne.s32.totalorder %s48_s17, %s2893_s1  ;;  %p2899_p12 = scmp.lt.s32.totalorder %s2893_s1, %s2893_s1 }
  0x21   :  { %p2900_p13 = por %p2899_p12, %p2898_p11 }
  0x23   :  { %p2901_p0 = pnand %p2900_p13, %p2894_p10 }
  0x25   :  { %2904 = shalt.err (!%p2901_p0)
}
  0x26   :  { %53 = dma.hbm_to_vmem [thread:$0]  %s3055_s3, 9216, %s48_s17, [#allocation6], %s2910_s29, %s2910_s29, %s2911_s30  }
  0x27   :  { %2905 = dma.done.wait [#allocation4], 896  }
  0x28   :  { %2906 = vsyncadd [#allocation4], 4294966400 }
  0x29   :  { %2907 = dma.done.wait [#allocation6], 28032  }
  0x2a   :  { %2908 = vsyncadd [#allocation6], 4294939264  ;;  %v2543_v1 = vld [vmem:[#allocation5 + $0xac] ss:$12 sps:$4 sm:$0xff]   ;;  %v2545_v2 = vld [vmem:[#allocation5 + $0xa8] ss:$12 sps:$4 sm:$0xff]  }
  0x2b   :  { %1114 = vmatprep.subr.bf16.mxu0 %v2543_v1  ;;  %v2546_v3 = vld [vmem:[#allocation5 + $0x22c] ss:$12 sps:$4 sm:$0xff]   ;;  %v2548_v4 = vld [vmem:[#allocation5 + $0x228] ss:$12 sps:$4 sm:$0xff]   ;;  %v2551_v6 = vld [vmem:[#allocation5 + $0x90] ss:$12 sps:$4 sm:$0xff]  }
  0x2c   :  { %1115 = vmatpush1.bf16.msra.mxu0 %v2545_v2  ;;  %v2549_v5 = vld [vmem:[#allocation5 + $0x94] ss:$12 sps:$4 sm:$0xff]   ;;  %1157 = vmatprep.subr.bf16.mxu1 %v2546_v3  ;;  %v2554_v8 = vld [vmem:[#allocation5 + $0x210] ss:$12 sps:$4 sm:$0xff]   ;;  %v2557_v10 = vld [vmem:[#allocation5 + $0x78] ss:$12 sps:$4 sm:$0xff]  }
  0x2d   :  { %v2552_v7 = vld [vmem:[#allocation5 + $0x214] ss:$12 sps:$4 sm:$0xff]   ;;  %1158 = vmatpush1.bf16.msra.mxu1 %v2548_v4  ;;  %1116 = vmatprep.subr.bf16.mxu0 %v2549_v5  ;;  %v2555_v9 = vld [vmem:[#allocation5 + $0x7c] ss:$12 sps:$4 sm:$0xff]   ;;  %v2561_v12 = vld [vmem:[#allocation5 + $0x64] ss:$12 sps:$4 sm:$0xff]  }
  0x2e   :  { %1159 = vmatprep.subr.bf16.mxu1 %v2552_v7  ;;  %v2558_v11 = vld [vmem:[#allocation5 + $0x1fc] ss:$12 sps:$4 sm:$0xff]   ;;  %v2560_v13 = vld [vmem:[#allocation5 + $0x1f8] ss:$12 sps:$4 sm:$0xff]   ;;  %v2563_v15 = vld [vmem:[#allocation5 + $0x60] ss:$12 sps:$4 sm:$0xff]  }
  0x2f   :  { %v2564_v14 = vld [vmem:[#allocation5 + $0x1e4] ss:$12 sps:$4 sm:$0xff]   ;;  %v2567_v16 = vld [vmem:[#allocation5 + $0x4c] ss:$12 sps:$4 sm:$0xff]   ;;  %v2569_v19 = vld [vmem:[#allocation5 + $0x48] ss:$12 sps:$4 sm:$0xff]  }
  0x30   :  { %1117 = vmatpush1.bf16.msra.mxu0 %v2551_v6  ;;  %v2566_v17 = vld [vmem:[#allocation5 + $0x1e0] ss:$12 sps:$4 sm:$0xff]   ;;  %v2572_v21 = vld [vmem:[#allocation5 + $0x1c8] ss:$12 sps:$4 sm:$0xff]   ;;  %v2575_v23 = vld [vmem:[#allocation5 + $0x30] ss:$12 sps:$4 sm:$0xff]  }
  0x31   :  { %1118 = vmatprep.subr.bf16.mxu0 %v2555_v9  ;;  %1160 = vmatpush1.bf16.msra.mxu1 %v2554_v8  ;;  %v2570_v18 = vld [vmem:[#allocation5 + $0x1cc] ss:$12 sps:$4 sm:$0xff]   ;;  %v2573_v20 = vld [vmem:[#allocation5 + $0x34] ss:$12 sps:$4 sm:$0xff]   ;;  %v2579_v24 = vld [vmem:[#allocation5 + $0x1c] ss:$12 sps:$4 sm:$0xff]  }
  0x32   :  { %1161 = vmatprep.subr.bf16.mxu1 %v2558_v11  ;;  %v2576_v22 = vld [vmem:[#allocation5 + $0x1b4] ss:$12 sps:$4 sm:$0xff]   ;;  %v2578_v25 = vld [vmem:[#allocation5 + $0x1b0] ss:$12 sps:$4 sm:$0xff]   ;;  %v2581_v27 = vld [vmem:[#allocation5 + $0x18] ss:$12 sps:$4 sm:$0xff]  }
  0x33   :  { %v2582_v26 = vld [vmem:[#allocation5 + $0x19c] ss:$12 sps:$4 sm:$0xff]   ;;  %v2585_v28 = vld [vmem:[#allocation5 + $0x4] ss:$12 sps:$4 sm:$0xff]   ;;  %v2587_v31 = vld [vmem:[#allocation5] ss:$12 sps:$4 sm:$0xff]  }
  0x34   :  { %1119 = vmatpush1.bf16.msra.mxu0 %v2557_v10  ;;  %v2584_v29 = vld [vmem:[#allocation5 + $0x198] ss:$12 sps:$4 sm:$0xff]   ;;  %v2590_v33 = vld [vmem:[#allocation5 + $0x180] ss:$12 sps:$4 sm:$0xff]   ;;  %v2593_v35 = vld [vmem:[#allocation5 + $0x168] ss:$12 sps:$4 sm:$0xff]  }
  0x35   :  { %1120 = vmatprep.subr.bf16.mxu0 %v2561_v12  ;;  %1162 = vmatpush1.bf16.msra.mxu1 %v2560_v13  ;;  %v2588_v30 = vld [vmem:[#allocation5 + $0x184] ss:$12 sps:$4 sm:$0xff]   ;;  %v2591_v32 = vld [vmem:[#allocation5 + $0x16c] ss:$12 sps:$4 sm:$0xff]   ;;  %v2597_v36 = vld [vmem:[#allocation5 + $0x154] ss:$12 sps:$4 sm:$0xff]  }
  0x36   :  { %1163 = vmatprep.subr.bf16.mxu1 %v2564_v14  ;;  %v2594_v34 = vld [vmem:[#allocation5 + $0x2ec] ss:$12 sps:$4 sm:$0xff]   ;;  %v2596_v37 = vld [vmem:[#allocation5 + $0x2e8] ss:$12 sps:$4 sm:$0xff]   ;;  %v2599_v39 = vld [vmem:[#allocation5 + $0x150] ss:$12 sps:$4 sm:$0xff]  }
  0x37   :  { %v2600_v38 = vld [vmem:[#allocation5 + $0x2d4] ss:$12 sps:$4 sm:$0xff]   ;;  %v2603_v40 = vld [vmem:[#allocation5 + $0x13c] ss:$12 sps:$4 sm:$0xff]   ;;  %v2605_v43 = vld [vmem:[#allocation5 + $0x138] ss:$12 sps:$4 sm:$0xff]  }
  0x38   :  { %1121 = vmatpush1.bf16.msra.mxu0 %v2563_v15  ;;  %v2602_v41 = vld [vmem:[#allocation5 + $0x2d0] ss:$12 sps:$4 sm:$0xff]   ;;  %v2608_v45 = vld [vmem:[#allocation5 + $0x2b8] ss:$12 sps:$4 sm:$0xff]   ;;  %v2611_v47 = vld [vmem:[#allocation5 + $0x120] ss:$12 sps:$4 sm:$0xff]  }
  0x39   :  { %1122 = vmatprep.subr.bf16.mxu0 %v2567_v16  ;;  %1164 = vmatpush1.bf16.msra.mxu1 %v2566_v17  ;;  %v2606_v42 = vld [vmem:[#allocation5 + $0x2bc] ss:$12 sps:$4 sm:$0xff]   ;;  %v2609_v44 = vld [vmem:[#allocation5 + $0x124] ss:$12 sps:$4 sm:$0xff]   ;;  %v2615_v49 = vld [vmem:[#allocation5 + $0x10c] ss:$12 sps:$4 sm:$0xff]  }
  0x3a   :  { %1165 = vmatprep.subr.bf16.mxu1 %v2570_v18  ;;  %v2612_v46 = vld [vmem:[#allocation5 + $0x2a4] ss:$12 sps:$4 sm:$0xff]   ;;  %v2640_v48 = vld [vmem:[#allocation3 + $0x4] ss:$28 sps:$4 sm:$0xff]   ;;  %v2621_v54 = vld [vmem:[#allocation5 + $0xf4] ss:$12 sps:$4 sm:$0xff]  }
  0x3b   :  { %v2614_v50 = vld [vmem:[#allocation5 + $0x2a0] ss:$12 sps:$4 sm:$0xff]   ;;  %1146 = vmatprep.mubr.bf16.mxu0 %v2640_v48  ;;  %v2971_v52 = vld [vmem:[#allocation3 + $0xc] ss:$28 sps:$4 sm:$0xff]   ;;  %v2627_v58 = vld [vmem:[#allocation5 + $0xdc] ss:$12 sps:$4 sm:$0xff]  }
  0x3c   :  { %1123 = vmatpush1.bf16.msra.mxu0 %v2569_v19  ;;  %v2618_v51 = vld [vmem:[#allocation5 + $0x28c] ss:$12 sps:$4 sm:$0xff]   ;;  %v2617_v53 = vld [vmem:[#allocation5 + $0x108] ss:$12 sps:$4 sm:$0xff]   ;;  %1189 = vmatprep.mubr.bf16.mxu1 %v2971_v52  ;;  %v2623_v57 = vld [vmem:[#allocation5 + $0xf0] ss:$12 sps:$4 sm:$0xff]  }
  0x3d   :  { %1124 = vmatprep.subr.bf16.mxu0 %v2573_v20  ;;  %1166 = vmatpush1.bf16.msra.mxu1 %v2572_v21  ;;  %v2620_v55 = vld [vmem:[#allocation5 + $0x288] ss:$12 sps:$4 sm:$0xff]   ;;  %v2626_v59 = vld [vmem:[#allocation5 + $0x270] ss:$12 sps:$4 sm:$0xff]   ;;  %v2629_v61 = vld [vmem:[#allocation5 + $0xd8] ss:$12 sps:$4 sm:$0xff]  }
  0x3e   :  { %1167 = vmatprep.subr.bf16.mxu1 %v2576_v22  ;;  %v2624_v56 = vld [vmem:[#allocation5 + $0x274] ss:$12 sps:$4 sm:$0xff]   ;;  %v2630_v60 = vld [vmem:[#allocation5 + $0x25c] ss:$12 sps:$4 sm:$0xff]   ;;  %v2633_v62 = vld [vmem:[#allocation5 + $0xc4] ss:$12 sps:$4 sm:$0xff]  }
  0x3f   :  { %v2632_v63 = vld [vmem:[#allocation5 + $0x258] ss:$12 sps:$4 sm:$0xff]   ;;  %v2635_v1 = vld [vmem:[#allocation5 + $0xc0] ss:$12 sps:$4 sm:$0xff]   ;;  %v2642_v5 = vld [vmem:[#allocation5 + $0x3a8] ss:$12 sps:$4 sm:$0xff]  }
  0x40   :  { %1125 = vmatpush1.bf16.msra.mxu0 %v2575_v23  ;;  %v2636_v0 = vld [vmem:[#allocation5 + $0x244] ss:$12 sps:$4 sm:$0xff]   ;;  %v2641_v2 = vld [vmem:[#allocation5 + $0x240] ss:$12 sps:$4 sm:$0xff]   ;;  %v2657_v12 = vld [vmem:[#allocation5 + $0x37c] ss:$12 sps:$4 sm:$0xff]  }
  0x41   :  { %1126 = vmatprep.subr.bf16.mxu0 %v2579_v24  ;;  %1168 = vmatpush1.bf16.msra.mxu1 %v2578_v25  ;;  %v2974_v3 = vld [vmem:[#allocation3] ss:$28 sps:$4 sm:$0xff]   ;;  %v2644_v4 = vld [vmem:[#allocation5 + $0x3ac] ss:$12 sps:$4 sm:$0xff]   ;;  %v2648_v6 = vld [vmem:[#allocation5 + $0x170] ss:$12 sps:$4 sm:$0xff]  }
  0x42   :  { %1169 = vmatprep.subr.bf16.mxu1 %v2582_v26  ;;  %v2976_v7 = vld [vmem:[#allocation3 + $0x8] ss:$28 sps:$4 sm:$0xff]   ;;  %v2652_v8 = vld [vmem:[#allocation5 + $0x394] ss:$12 sps:$4 sm:$0xff]   ;;  %v2653_v10 = vld [vmem:[#allocation5 + $0x158] ss:$12 sps:$4 sm:$0xff]  }
  0x43   :  { %v2649_v9 = vld [vmem:[#allocation5 + $0xb0] ss:$12 sps:$4 sm:$0xff]   ;;  %v2654_v13 = vld [vmem:[#allocation5 + $0x98] ss:$12 sps:$4 sm:$0xff]   ;;  %v2658_v14 = vld [vmem:[#allocation5 + $0x140] ss:$12 sps:$4 sm:$0xff]  }
  0x44   :  { %1127 = vmatpush1.bf16.msra.mxu0 %v2581_v27  ;;  %v2650_v11 = vld [vmem:[#allocation5 + $0x390] ss:$12 sps:$4 sm:$0xff]   ;;  %v2655_v15 = vld [vmem:[#allocation5 + $0x378] ss:$12 sps:$4 sm:$0xff]   ;;  %v2659_v17 = vld [vmem:[#allocation5 + $0x80] ss:$12 sps:$4 sm:$0xff]  }
  0x45   :  { %1128 = vmatprep.subr.bf16.mxu0 %v2585_v28  ;;  %1170 = vmatpush1.bf16.msra.mxu1 %v2584_v29  ;;  %v2662_v16 = vld [vmem:[#allocation5 + $0x364] ss:$12 sps:$4 sm:$0xff]   ;;  %v2663_v18 = vld [vmem:[#allocation5 + $0x128] ss:$12 sps:$4 sm:$0xff]   ;;  %v2660_v19 = vld [vmem:[#allocation5 + $0x360] ss:$12 sps:$4 sm:$0xff]  }
  0x46   :  { %1171 = vmatprep.subr.bf16.mxu1 %v2588_v30  ;;  %v2667_v20 = vld [vmem:[#allocation5 + $0x34c] ss:$12 sps:$4 sm:$0xff]   ;;  %v2664_v21 = vld [vmem:[#allocation5 + $0x68] ss:$12 sps:$4 sm:$0xff]   ;;  %v2668_v22 = vld [vmem:[#allocation5 + $0x110] ss:$12 sps:$4 sm:$0xff]  }
  0x47   :  { %v2665_v23 = vld [vmem:[#allocation5 + $0x348] ss:$12 sps:$4 sm:$0xff]   ;;  %v2669_v25 = vld [vmem:[#allocation5 + $0x50] ss:$12 sps:$4 sm:$0xff]   ;;  %v2673_v26 = vld [vmem:[#allocation5 + $0xf8] ss:$12 sps:$4 sm:$0xff]  }
  0x48   :  { %1129 = vmatpush1.bf16.msra.mxu0 %v2587_v31  ;;  %v2672_v24 = vld [vmem:[#allocation5 + $0x334] ss:$12 sps:$4 sm:$0xff]   ;;  %v2670_v27 = vld [vmem:[#allocation5 + $0x330] ss:$12 sps:$4 sm:$0xff]   ;;  %v2674_v29 = vld [vmem:[#allocation5 + $0x38] ss:$12 sps:$4 sm:$0xff]  }
  0x49   :  { %1130 = vmatprep.subr.bf16.mxu0 %v2591_v32  ;;  %1172 = vmatpush1.bf16.msra.mxu1 %v2590_v33  ;;  %v2677_v28 = vld [vmem:[#allocation5 + $0x31c] ss:$12 sps:$4 sm:$0xff]   ;;  %v2678_v30 = vld [vmem:[#allocation5 + $0xe0] ss:$12 sps:$4 sm:$0xff]   ;;  %v2675_v31 = vld [vmem:[#allocation5 + $0x318] ss:$12 sps:$4 sm:$0xff]  }
  0x4a   :  { %1173 = vmatprep.subr.bf16.mxu1 %v2594_v34  ;;  %v2682_v32 = vld [vmem:[#allocation5 + $0x304] ss:$12 sps:$4 sm:$0xff]   ;;  %v2679_v33 = vld [vmem:[#allocation5 + $0x20] ss:$12 sps:$4 sm:$0xff]   ;;  %v2683_v34 = vld [vmem:[#allocation5 + $0xc8] ss:$12 sps:$4 sm:$0xff]  }
  0x4b   :  { %vm2918_vm0 = vmmov 0   ;;  %vm1110_vm1 = vcmask 130048   ;;  %vm2170_vm2 = vcmask 7168  }
  0x4c   :  { %1131 = vmatpush2.bf16.msra.mxu0 %v2593_v35  ;;  %v2680_v35 = vld [vmem:[#allocation5 + $0x300] ss:$12 sps:$4 sm:$0xff]  }
  0x4d   :  { %1132 = vmatprep.subr.bf16.mxu0 %v2597_v36  ;;  %1174 = vmatpush2.bf16.msra.mxu1 %v2596_v37  ;;  %v2687_v36 = vld [vmem:[#allocation5 + $0x46c] ss:$12 sps:$4 sm:$0xff]   ;;  %v2684_v37 = vld [vmem:[#allocation5 + $0x8] ss:$12 sps:$4 sm:$0xff]  }
  0x4e   :  { %1175 = vmatprep.subr.bf16.mxu1 %v2600_v38  ;;  %v2688_v38 = vld [vmem:[#allocation5 + $0x2f0] ss:$12 sps:$4 sm:$0xff]  }
  0x50   :  { %1133 = vmatpush2.bf16.msra.mxu0 %v2599_v39  ;;  %v2685_v39 = vld [vmem:[#allocation5 + $0x468] ss:$12 sps:$4 sm:$0xff]  }
  0x51   :  { %1134 = vmatprep.subr.bf16.mxu0 %v2603_v40  ;;  %1176 = vmatpush2.bf16.msra.mxu1 %v2602_v41  ;;  %v2689_v40 = vld [vmem:[#allocation5 + $0x230] ss:$12 sps:$4 sm:$0xff]   ;;  %v2692_v41 = vld [vmem:[#allocation5 + $0x454] ss:$12 sps:$4 sm:$0xff]  }
  0x52   :  { %1177 = vmatprep.subr.bf16.mxu1 %v2606_v42  ;;  %v2690_v42 = vld [vmem:[#allocation5 + $0x450] ss:$12 sps:$4 sm:$0xff]  }
  0x54   :  { %1135 = vmatpush2.bf16.msra.mxu0 %v2605_v43  ;;  %v2693_v43 = vld [vmem:[#allocation5 + $0x2d8] ss:$12 sps:$4 sm:$0xff]  }
  0x55   :  { %1136 = vmatprep.subr.bf16.mxu0 %v2609_v44  ;;  %1178 = vmatpush2.bf16.msra.mxu1 %v2608_v45  ;;  %v2980_v44 = vld [vmem:[#allocation3 + $0x14] ss:$28 sps:$4 sm:$0xff]  }
  0x56   :  { %1179 = vmatprep.subr.bf16.mxu1 %v2612_v46  ;;  %v2694_v45 = vld [vmem:[#allocation5 + $0x218] ss:$12 sps:$4 sm:$0xff]   ;;  %v2697_v46 = vld [vmem:[#allocation5 + $0x43c] ss:$12 sps:$4 sm:$0xff]  }
  0x58   :  { %1137 = vmatpush2.bf16.msra.mxu0 %v2611_v47  ;;  %v2695_v47 = vld [vmem:[#allocation5 + $0x438] ss:$12 sps:$4 sm:$0xff]  }
  0x59   :  { %1138 = vmatprep.subr.bf16.mxu0 %v2615_v49  ;;  %1180 = vmatpush2.bf16.msra.mxu1 %v2614_v50  ;;  %v2699_v49 = vld [vmem:[#allocation5 + $0x200] ss:$12 sps:$4 sm:$0xff]   ;;  %v2702_v50 = vld [vmem:[#allocation5 + $0x424] ss:$12 sps:$4 sm:$0xff]  }
  0x5a   :  { %1181 = vmatprep.subr.bf16.mxu1 %v2618_v51  ;;  %v2700_v51 = vld [vmem:[#allocation5 + $0x420] ss:$12 sps:$4 sm:$0xff]  }
  0x5c   :  { %1139 = vmatpush2.bf16.msra.mxu0 %v2617_v53  ;;  %v2703_v53 = vld [vmem:[#allocation5 + $0x2a8] ss:$12 sps:$4 sm:$0xff]  }
  0x5d   :  { %1140 = vmatprep.subr.bf16.mxu0 %v2621_v54  ;;  %1182 = vmatpush2.bf16.msra.mxu1 %v2620_v55  ;;  %v2704_v54 = vld [vmem:[#allocation5 + $0x1e8] ss:$12 sps:$4 sm:$0xff]   ;;  %v2707_v55 = vld [vmem:[#allocation5 + $0x40c] ss:$12 sps:$4 sm:$0xff]  }
  0x5e   :  { %1183 = vmatprep.subr.bf16.mxu1 %v2624_v56  ;;  %v2705_v56 = vld [vmem:[#allocation5 + $0x408] ss:$12 sps:$4 sm:$0xff]  }
  0x60   :  { %1141 = vmatpush2.bf16.msra.mxu0 %v2623_v57  ;;  %v2708_v57 = vld [vmem:[#allocation5 + $0x290] ss:$12 sps:$4 sm:$0xff]  }
  0x61   :  { %1142 = vmatprep.subr.bf16.mxu0 %v2627_v58  ;;  %1184 = vmatpush2.bf16.msra.mxu1 %v2626_v59  ;;  %v2709_v58 = vld [vmem:[#allocation5 + $0x1d0] ss:$12 sps:$4 sm:$0xff]  }
  0x62   :  { %1185 = vmatprep.subr.bf16.mxu1 %v2630_v60  ;;  %v2710_v59 = vld [vmem:[#allocation5 + $0x3f0] ss:$12 sps:$4 sm:$0xff]   ;;  %v2713_v60 = vld [vmem:[#allocation5 + $0x278] ss:$12 sps:$4 sm:$0xff]  }
  0x64   :  { %1143 = vmatpush2.bf16.msra.mxu0 %v2629_v61  ;;  %v2714_v61 = vld [vmem:[#allocation5 + $0x1b8] ss:$12 sps:$4 sm:$0xff]  }
  0x65   :  { %1144 = vmatprep.subr.bf16.mxu0 %v2633_v62  ;;  %1186 = vmatpush2.bf16.msra.mxu1 %v2632_v63  ;;  %v2717_v62 = vld [vmem:[#allocation5 + $0x3dc] ss:$12 sps:$4 sm:$0xff]   ;;  %v2715_v63 = vld [vmem:[#allocation5 + $0x3d8] ss:$12 sps:$4 sm:$0xff]  }
  0x66   :  { %1187 = vmatprep.subr.bf16.mxu1 %v2636_v0  ;;  %v2718_v0 = vld [vmem:[#allocation5 + $0x260] ss:$12 sps:$4 sm:$0xff]  }
  0x68   :  { %1145 = vmatpush2.bf16.msra.mxu0 %v2635_v1  ;;  %v2719_v1 = vld [vmem:[#allocation5 + $0x1a0] ss:$12 sps:$4 sm:$0xff]  }
  0x69   :  { %1200 = vmatprep.subr.bf16.mxu0 %v2644_v4  ;;  %1188 = vmatpush2.bf16.msra.mxu1 %v2641_v2  ;;  %v2722_v2 = vld [vmem:[#allocation5 + $0x3c4] ss:$12 sps:$4 sm:$0xff]   ;;  %v2720_v4 = vld [vmem:[#allocation5 + $0x3c0] ss:$12 sps:$4 sm:$0xff]  }
  0x6a   :  { %2408 = vmatprep.subr.bf16.mxu1 %v2648_v6  ;;  %v2727_v6 = vld [vmem:[#allocation5 + $0x188] ss:$12 sps:$4 sm:$0xff]  }
  0x6b   :  { %1147 = vmatmul.mubr.bf16.vlgmr.msra.gmra.mxu0 %v2974_v3 }
  0x6c   :  { %1201 = vmatpush1.bf16.msra.mxu0 %v2642_v5  ;;  %1190 = vmatmul.mubr.bf16.vlgmr.msra.gmra.mxu1 %v2976_v7  ;;  %v2730_v5 = vld [vmem:[#allocation5 + $0x484] ss:$12 sps:$4 sm:$0xff]  }
  0x6d   :  { %1202 = vmatprep.subr.bf16.mxu0 %v2652_v8  ;;  %2409 = vmatpush3.bf16.msra.mxu1 %v2649_v9  ;;  %v2985_v8 = vld [vmem:[#allocation3 + $0x10] ss:$28 sps:$4 sm:$0xff]   ;;  %v2728_v9 = vld [vmem:[#allocation5 + $0x480] ss:$12 sps:$4 sm:$0xff]  }
  0x6e   :  { %1318 = vmatprep.mubr.bf16.mxu1 %v2640_v48  ;;  %2410 = vmatprep.subr.bf16.mxu1 %v2653_v10  ;;  %v2698_v48 = vld [vmem:[#allocation5 + $0x2c0] ss:$12 sps:$4 sm:$0xff]   ;;  %v2731_v10 = vld [vmem:[#allocation5 + $0x470] ss:$12 sps:$4 sm:$0xff]  }
  0x6f   :  { %1232 = vmatprep.mubr.bf16.mxu0 %v2980_v44 }
  0x70   :  { %1203 = vmatpush1.bf16.msra.mxu0 %v2650_v11  ;;  %v2748_v11 = vld [vmem:[#allocation5 + $0x488] ss:$12 sps:$4 sm:$0xff]  }
  0x71   :  { %1204 = vmatprep.subr.bf16.mxu0 %v2657_v12  ;;  %2411 = vmatpush3.bf16.msra.mxu1 %v2654_v13  ;;  %v2916_v12 = vmov 0.0   ;;  %v2917_v13 = vmov 0  }
  0x72   :  { %2412 = vmatprep.subr.bf16.mxu1 %v2658_v14  ;;  %v2732_v14 = vld [vmem:[#allocation3 + $0x18] ss:$28 sps:$4 sm:$0xff]  }
  0x74   :  { %1205 = vmatpush1.bf16.msra.mxu0 %v2655_v15  ;;  %v2733_v15 = vld [vmem:[#allocation5 + $0x3b0] ss:$12 sps:$4 sm:$0xff]  }
  0x75   :  { %1206 = vmatprep.subr.bf16.mxu0 %v2662_v16  ;;  %2413 = vmatpush3.bf16.msra.mxu1 %v2659_v17  ;;  %v2734_v16 = vld [vmem:[#allocation5 + $0x458] ss:$12 sps:$4 sm:$0xff]  }
  0x76   :  { %2414 = vmatprep.subr.bf16.mxu1 %v2663_v18  ;;  %v2735_v17 = vld [vmem:[#allocation5 + $0x398] ss:$12 sps:$4 sm:$0xff]   ;;  %v2749_v18 = vld [vmem:[#allocation7 + $0xa8] ss:$12 sps:$4 sm:$0xff]  }
  0x78   :  { %1207 = vmatpush1.bf16.msra.mxu0 %v2660_v19  ;;  %v2751_v19 = vld [vmem:[#allocation7 + $0xac] ss:$12 sps:$4 sm:$0xff]  }
  0x79   :  { %1208 = vmatprep.subr.bf16.mxu0 %v2667_v20  ;;  %2415 = vmatpush3.bf16.msra.mxu1 %v2664_v21  ;;  %v2736_v20 = vld [vmem:[#allocation5 + $0x440] ss:$12 sps:$4 sm:$0xff]   ;;  %v2752_v21 = vld [vmem:[#allocation7 + $0x90] ss:$12 sps:$4 sm:$0xff]  }
  0x7a   :  { %2416 = vmatprep.subr.bf16.mxu1 %v2668_v22  ;;  %v2737_v22 = vld [vmem:[#allocation5 + $0x380] ss:$12 sps:$4 sm:$0xff]  }
  0x7c   :  { %1209 = vmatpush1.bf16.msra.mxu0 %v2665_v23  ;;  %v2757_v23 = vld [vmem:[#allocation7 + $0x7c] ss:$12 sps:$4 sm:$0xff]  }
  0x7d   :  { %1210 = vmatprep.subr.bf16.mxu0 %v2672_v24  ;;  %2417 = vmatpush3.bf16.msra.mxu1 %v2669_v25  ;;  %v2738_v24 = vld [vmem:[#allocation5 + $0x428] ss:$12 sps:$4 sm:$0xff]   ;;  %v2755_v25 = vld [vmem:[#allocation7 + $0x78] ss:$12 sps:$4 sm:$0xff]  }
  0x7e   :  { %2418 = vmatprep.subr.bf16.mxu1 %v2673_v26  ;;  %v2739_v26 = vld [vmem:[#allocation5 + $0x368] ss:$12 sps:$4 sm:$0xff]  }
  0x80   :  { %1211 = vmatpush1.bf16.msra.mxu0 %v2670_v27  ;;  %v2760_v27 = vld [vmem:[#allocation7 + $0x64] ss:$12 sps:$4 sm:$0xff]  }
  0x81   :  { %1212 = vmatprep.subr.bf16.mxu0 %v2677_v28  ;;  %2419 = vmatpush3.bf16.msra.mxu1 %v2674_v29  ;;  %v2740_v28 = vld [vmem:[#allocation5 + $0x410] ss:$12 sps:$4 sm:$0xff]   ;;  %v2758_v29 = vld [vmem:[#allocation7 + $0x60] ss:$12 sps:$4 sm:$0xff]  }
  0x82   :  { %2420 = vmatprep.subr.bf16.mxu1 %v2678_v30  ;;  %v2741_v30 = vld [vmem:[#allocation5 + $0x350] ss:$12 sps:$4 sm:$0xff]  }
  0x84   :  { %1213 = vmatpush1.bf16.msra.mxu0 %v2675_v31  ;;  %v2763_v31 = vld [vmem:[#allocation7 + $0x4c] ss:$12 sps:$4 sm:$0xff]  }
  0x85   :  { %1214 = vmatprep.subr.bf16.mxu0 %v2682_v32  ;;  %2421 = vmatpush3.bf16.msra.mxu1 %v2679_v33  ;;  %v2742_v32 = vld [vmem:[#allocation5 + $0x3f8] ss:$12 sps:$4 sm:$0xff]   ;;  %v2761_v33 = vld [vmem:[#allocation7 + $0x48] ss:$12 sps:$4 sm:$0xff]  }
  0x86   :  { %2422 = vmatprep.subr.bf16.mxu1 %v2683_v34  ;;  %v2743_v34 = vld [vmem:[#allocation5 + $0x338] ss:$12 sps:$4 sm:$0xff]  }
  0x88   :  { %1215 = vmatpush1.bf16.msra.mxu0 %v2680_v35  ;;  %v2766_v35 = vld [vmem:[#allocation7 + $0x34] ss:$12 sps:$4 sm:$0xff]  }
  0x89   :  { %1216 = vmatprep.subr.bf16.mxu0 %v2687_v36  ;;  %2423 = vmatpush3.bf16.msra.mxu1 %v2684_v37  ;;  %v2744_v36 = vld [vmem:[#allocation5 + $0x3e0] ss:$12 sps:$4 sm:$0xff]   ;;  %v2764_v37 = vld [vmem:[#allocation7 + $0x30] ss:$12 sps:$4 sm:$0xff]  }
  0x8a   :  { %2430 = vmatprep.subr.bf16.mxu1 %v2688_v38  ;;  %v2745_v38 = vld [vmem:[#allocation5 + $0x320] ss:$12 sps:$4 sm:$0xff]  }
  0x8c   :  { %1217 = vmatpush2.bf16.msra.mxu0 %v2685_v39  ;;  %1319 = vmatmul.mubr.bf16.vlgmr.msra.gmra.mxu1 %v2974_v3  ;;  %v2723_v3 = vld [vmem:[#allocation5 + $0x248] ss:$12 sps:$4 sm:$0xff]  }
  0x8d   :  { %1218 = vmatprep.subr.bf16.mxu0 %v2692_v41  ;;  %2431 = vmatpush3.bf16.msra.mxu1 %v2689_v40  ;;  %v2769_v39 = vld [vmem:[#allocation7 + $0x1c] ss:$12 sps:$4 sm:$0xff]   ;;  %v2767_v41 = vld [vmem:[#allocation7 + $0x18] ss:$12 sps:$4 sm:$0xff]  }
  0x8e   :  { %2432 = vmatprep.subr.bf16.mxu1 %v2693_v43  ;;  %1359 = vmatprep.mubr.bf16.mxu1 %v2971_v52  ;;  %v2712_v52 = vld [vmem:[#allocation5 + $0x3f4] ss:$12 sps:$4 sm:$0xff]   ;;  %v2772_v43 = vld [vmem:[#allocation7 + $0x4] ss:$12 sps:$4 sm:$0xff]  }
  0x8f   :  { %v2746_v40 = vld [vmem:[#allocation5 + $0x3c8] ss:$12 sps:$4 sm:$0xff]  }
  0x90   :  { %1219 = vmatpush2.bf16.msra.mxu0 %v2690_v42  ;;  %v2747_v42 = vld [vmem:[#allocation5 + $0x308] ss:$12 sps:$4 sm:$0xff]  }
  0x91   :  { %1220 = vmatprep.subr.bf16.mxu0 %v2697_v46  ;;  %2433 = vmatpush3.bf16.msra.mxu1 %v2694_v45  ;;  %v2775_v45 = vld [vmem:[#allocation7 + $0x16c] ss:$12 sps:$4 sm:$0xff]   ;;  %v2773_v46 = vld [vmem:[#allocation7 + $0x168] ss:$12 sps:$4 sm:$0xff]  }
  0x92   :  { %2434 = vmatprep.subr.bf16.mxu1 %v2698_v48  ;;  %v2776_v48 = vld [vmem:[#allocation7 + $0x150] ss:$12 sps:$4 sm:$0xff]  }
  0x94   :  { %1221 = vmatpush2.bf16.msra.mxu0 %v2695_v47  ;;  %v2778_v47 = vld [vmem:[#allocation7 + $0x154] ss:$12 sps:$4 sm:$0xff]  }
  0x95   :  { %1222 = vmatprep.subr.bf16.mxu0 %v2702_v50  ;;  %2435 = vmatpush3.bf16.msra.mxu1 %v2699_v49  ;;  %v2781_v49 = vld [vmem:[#allocation7 + $0x13c] ss:$12 sps:$4 sm:$0xff]   ;;  %v2779_v50 = vld [vmem:[#allocation7 + $0x138] ss:$12 sps:$4 sm:$0xff]  }
  0x96   :  { %2436 = vmatprep.subr.bf16.mxu1 %v2703_v53  ;;  %v2782_v53 = vld [vmem:[#allocation7 + $0x120] ss:$12 sps:$4 sm:$0xff]  }
  0x98   :  { %1223 = vmatpush2.bf16.msra.mxu0 %v2700_v51  ;;  %v2784_v51 = vld [vmem:[#allocation7 + $0x124] ss:$12 sps:$4 sm:$0xff]  }
  0x99   :  { %1224 = vmatprep.subr.bf16.mxu0 %v2707_v55  ;;  %2437 = vmatpush3.bf16.msra.mxu1 %v2704_v54  ;;  %v2787_v54 = vld [vmem:[#allocation7 + $0x10c] ss:$12 sps:$4 sm:$0xff]   ;;  %v2785_v55 = vld [vmem:[#allocation7 + $0x108] ss:$12 sps:$4 sm:$0xff]  }
  0x9a   :  { %2438 = vmatprep.subr.bf16.mxu1 %v2708_v57  ;;  %v2788_v57 = vld [vmem:[#allocation7 + $0xf0] ss:$12 sps:$4 sm:$0xff]  }
  0x9c   :  { %1225 = vmatpush2.bf16.msra.mxu0 %v2705_v56  ;;  %v2790_v56 = vld [vmem:[#allocation7 + $0xf4] ss:$12 sps:$4 sm:$0xff]  }
  0x9d   :  { %1226 = vmatprep.subr.bf16.mxu0 %v2712_v52  ;;  %2439 = vmatpush3.bf16.msra.mxu1 %v2709_v58  ;;  %v2793_v58 = vld [vmem:[#allocation7 + $0xdc] ss:$12 sps:$4 sm:$0xff]   ;;  %v2791_v52 = vld [vmem:[#allocation7 + $0xd8] ss:$12 sps:$4 sm:$0xff]  }
  0x9e   :  { %2440 = vmatprep.subr.bf16.mxu1 %v2713_v60  ;;  %v2794_v60 = vld [vmem:[#allocation7 + $0xc0] ss:$12 sps:$4 sm:$0xff]  }
  0xa0   :  { %1227 = vmatpush2.bf16.msra.mxu0 %v2710_v59  ;;  %v2796_v59 = vld [vmem:[#allocation7 + $0xc4] ss:$12 sps:$4 sm:$0xff]  }
  0xa1   :  { %1228 = vmatprep.subr.bf16.mxu0 %v2717_v62  ;;  %2441 = vmatpush3.bf16.msra.mxu1 %v2714_v61  ;;  %v2797_v61 = vld [vmem:[#allocation7 + $0x228] ss:$12 sps:$4 sm:$0xff]   ;;  %v2799_v62 = vld [vmem:[#allocation7 + $0x22c] ss:$12 sps:$4 sm:$0xff]  }
  0xa2   :  { %2442 = vmatprep.subr.bf16.mxu1 %v2718_v0  ;;  %v2801_v0 = vld [vmem:[#allocation7 + $0x210] ss:$12 sps:$4 sm:$0xff]  }
  0xa4   :  { %1229 = vmatpush2.bf16.msra.mxu0 %v2715_v63  ;;  %v2803_v63 = vld [vmem:[#allocation7 + $0x214] ss:$12 sps:$4 sm:$0xff]  }
  0xa5   :  { %1230 = vmatprep.subr.bf16.mxu0 %v2722_v2  ;;  %2443 = vmatpush3.bf16.msra.mxu1 %v2719_v1  ;;  %v2807_v1 = vld [vmem:[#allocation7 + $0x1fc] ss:$12 sps:$4 sm:$0xff]   ;;  %v2805_v2 = vld [vmem:[#allocation7 + $0x1f8] ss:$12 sps:$4 sm:$0xff]  }
  0xa6   :  { %2444 = vmatprep.subr.bf16.mxu1 %v2723_v3  ;;  %v2811_v3 = vld [vmem:[#allocation7 + $0x1e4] ss:$12 sps:$4 sm:$0xff]  }
  0xa8   :  { %1231 = vmatpush2.bf16.msra.mxu0 %v2720_v4  ;;  %v2809_v4 = vld [vmem:[#allocation7 + $0x1e0] ss:$12 sps:$4 sm:$0xff]  }
  0xa9   :  { %1257 = vmatprep.subr.bf16.mxu0 %v2730_v5  ;;  %2445 = vmatpush3.bf16.msra.mxu1 %v2727_v6  ;;  %v2815_v5 = vld [vmem:[#allocation7 + $0x1cc] ss:$12 sps:$4 sm:$0xff]   ;;  %v2813_v6 = vld [vmem:[#allocation7 + $0x1c8] ss:$12 sps:$4 sm:$0xff]  }
  0xaa   :  { %2507 = vmatprep.subr.bf16.mxu1 %v2916_v12 }
  0xab   :  { %1233 = vmatmul.mubr.bf16.vlgmr.msra.gmra.mxu0 %v2985_v8 }
  0xac   :  { %1258 = vmatpush1.bf16.msra.mxu0 %v2728_v9  ;;  %1275 = vmatprep.mubr.bf16.mxu0 %v2917_v13  ;;  %v2817_v9 = vld [vmem:[#allocation7 + $0x1b0] ss:$12 sps:$4 sm:$0xff]  }
  0xad   :  { %1360 = vmatmul.mubr.bf16.vlgmr.msra.gmra.mxu1 %v2976_v7  ;;  %2452 = vmatprep.subr.bf16.mxu0 %v2731_v10  ;;  %v2754_v7 = vld [vmem:[#allocation7 + $0x94] ss:$12 sps:$4 sm:$0xff]   ;;  %v2823_v10 = vld [vmem:[#allocation7 + $0x19c] ss:$12 sps:$4 sm:$0xff]  }
  0xae   :  { %2508 = vmatpush3.bf16.msra.mxu1 %v2748_v11  ;;  %2509 = vmatprep.mubr.msk.bf16.mxu1 %vm2918_vm0, %v2916_v12  ;;  %v2821_v11 = vld [vmem:[#allocation7 + $0x198] ss:$12 sps:$4 sm:$0xff]  }
  0xaf   :  { %1956 = vmatprep.subr.bf16.mxu1 %v2751_v19 }
  0xb3   :  { %2333 = vmatmul.mubr.msk.bf16.vlgmr.msra.gmra.mxu0 %vm1110_vm1, %v2732_v14 }
  0xb4   :  { %2453 = vmatpush3.bf16.msra.mxu0 %v2733_v15  ;;  %1400 = vmatprep.mubr.bf16.mxu0 %v2980_v44  ;;  %v2770_v44 = vld [vmem:[#allocation7] ss:$12 sps:$4 sm:$0xff]   ;;  %v2829_v15 = vld [vmem:[#allocation7 + $0x170] ss:$12 sps:$4 sm:$0xff]  }
  0xb5   :  { %2454 = vmatprep.subr.bf16.mxu0 %v2734_v16  ;;  %2510 = vmatmul.mubr.msk.bf16.vlgmr.msra.gmra.mxu1 %vm1110_vm1, %v2732_v14  ;;  %v2825_v14 = vld [vmem:[#allocation7 + $0x180] ss:$12 sps:$4 sm:$0xff]  }
  0xb6   :  { %1957 = vmatpush1.bf16.msra.mxu1 %v2749_v18 }
  0xb7   :  { %1958 = vmatprep.subr.bf16.mxu1 %v2754_v7 }
  0xb8   :  { %2455 = vmatpush3.bf16.msra.mxu0 %v2735_v17 }
  0xb9   :  { %2456 = vmatprep.subr.bf16.mxu0 %v2736_v20 }
  0xba   :  { %1959 = vmatpush1.bf16.msra.mxu1 %v2752_v21  ;;  %v276_v21 = vlaneseq }
  0xbb   :  { %1960 = vmatprep.subr.bf16.mxu1 %v2757_v23 }
  0xbc   :  { %2457 = vmatpush3.bf16.msra.mxu0 %v2737_v22 }
  0xbd   :  { %2458 = vmatprep.subr.bf16.mxu0 %v2738_v24  ;;  %v277_v24 = vshrl.u32 %v276_v21, 7  ;;  %v2820_v21 = vld [vmem:[#allocation7 + $0x1b8] ss:$12 sps:$4 sm:$0xff]  }
  0xbe   :  { %1961 = vmatpush1.bf16.msra.mxu1 %v2755_v25 }
  0xbf   :  { %1962 = vmatprep.subr.bf16.mxu1 %v2760_v27  ;;  %v3003_v27 = vsub.s32 1, %v277_v24 }
  0xc0   :  { %2459 = vmatpush3.bf16.msra.mxu0 %v2739_v26 }
  0xc1   :  { %2460 = vmatprep.subr.bf16.mxu0 %v2740_v28  ;;  %v274_v28 = vld [vmem:[%s3054_s2] sm:$0x7] }
  0xc2   :  { %1963 = vmatpush1.bf16.msra.mxu1 %v2758_v29  ;;  %v3008_v29 = vsub.s32 0, %v277_v24 }
  0xc3   :  { %1964 = vmatprep.subr.bf16.mxu1 %v2763_v31 }
  0xc4   :  { %2461 = vmatpush3.bf16.msra.mxu0 %v2741_v30 }
  0xc5   :  { %2462 = vmatprep.subr.bf16.mxu0 %v2742_v32 }
  0xc6   :  { %1965 = vmatpush1.bf16.msra.mxu1 %v2761_v33  ;;  %v283_v33 = vrot.slane %v274_v28, %v3003_v27 }
  0xc7   :  { %1966 = vmatprep.subr.bf16.mxu1 %v2766_v35 }
  0xc8   :  { %2463 = vmatpush3.bf16.msra.mxu0 %v2743_v34  ;;  %v279_v34 = vrot.slane %v274_v28, %v3008_v29 }
  0xc9   :  { %2464 = vmatprep.subr.bf16.mxu0 %v2744_v36 }
  0xca   :  { %1967 = vmatpush1.bf16.msra.mxu1 %v2764_v37 }
  0xcb   :  { %1968 = vmatprep.subr.bf16.mxu1 %v2769_v39 }
  0xcc   :  { %2465 = vmatpush3.bf16.msra.mxu0 %v2745_v38 }
  0xcd   :  { %2466 = vmatprep.subr.bf16.mxu0 %v2746_v40 }
  0xce   :  { %1969 = vmatpush1.bf16.msra.mxu1 %v2767_v41 }
  0xcf   :  { %1970 = vmatprep.subr.bf16.mxu1 %v2772_v43 }
  0xd0   :  { %2467 = vmatpush3.bf16.msra.mxu0 %v2747_v42 }
  0xd1   :  { %1999 = vmatprep.subr.bf16.mxu0 %v2799_v62 }
  0xd2   :  { %1971 = vmatpush1.bf16.msra.mxu1 %v2770_v44 }
  0xd3   :  { %1401 = vmatmul.mubr.bf16.vlgmr.msra.gmra.mxu0 %v2985_v8  ;;  %1972 = vmatprep.subr.bf16.mxu1 %v2775_v45  ;;  %v2819_v8 = vld [vmem:[#allocation7 + $0x1b4] ss:$12 sps:$4 sm:$0xff]  }
  0xd4   :  { %2031 = vmatprep.mubr.bf16.mxu0 %v2917_v13  ;;  %2000 = vmatpush1.bf16.msra.mxu0 %v2797_v61  ;;  %v2827_v13 = vld [vmem:[#allocation7 + $0x184] ss:$12 sps:$4 sm:$0xff]  }
  0xd5   :  { %2001 = vmatprep.subr.bf16.mxu0 %v2803_v63 }
  0xd6   :  { %1973 = vmatpush2.bf16.msra.mxu1 %v2773_v46 }
  0xd7   :  { %1974 = vmatprep.subr.bf16.mxu1 %v2778_v47 }
  0xd8   :  { %2002 = vmatpush1.bf16.msra.mxu0 %v2801_v0 }
  0xd9   :  { %2003 = vmatprep.subr.bf16.mxu0 %v2807_v1 }
  0xda   :  { %1975 = vmatpush2.bf16.msra.mxu1 %v2776_v48 }
  0xdb   :  { %1976 = vmatprep.subr.bf16.mxu1 %v2781_v49 }
  0xdc   :  { %2004 = vmatpush1.bf16.msra.mxu0 %v2805_v2 }
  0xdd   :  { %2005 = vmatprep.subr.bf16.mxu0 %v2811_v3 }
  0xde   :  { %1977 = vmatpush2.bf16.msra.mxu1 %v2779_v50 }
  0xdf   :  { %1978 = vmatprep.subr.bf16.mxu1 %v2784_v51 }
  0xe0   :  { %2006 = vmatpush1.bf16.msra.mxu0 %v2809_v4 }
  0xe1   :  { %2007 = vmatprep.subr.bf16.mxu0 %v2815_v5 }
  0xe2   :  { %1979 = vmatpush2.bf16.msra.mxu1 %v2782_v53 }
  0xe3   :  { %1980 = vmatprep.subr.bf16.mxu1 %v2787_v54 }
  0xe4   :  { %2008 = vmatpush1.bf16.msra.mxu0 %v2813_v6 }
  0xe5   :  { %2009 = vmatprep.subr.bf16.mxu0 %v2819_v8  ;;  %v2800_v8 = vld [vmem:[#allocation7 + $0x230] ss:$12 sps:$4 sm:$0xff]  }
  0xe6   :  { %1981 = vmatpush2.bf16.msra.mxu1 %v2785_v55 }
  0xe7   :  { %1982 = vmatprep.subr.bf16.mxu1 %v2790_v56 }
  0xe8   :  { %2010 = vmatpush1.bf16.msra.mxu0 %v2817_v9 }
  0xe9   :  { %2011 = vmatprep.subr.bf16.mxu0 %v2823_v10  ;;  %v2804_v10 = vld [vmem:[#allocation7 + $0x218] ss:$12 sps:$4 sm:$0xff]  }
  0xea   :  { %1983 = vmatpush2.bf16.msra.mxu1 %v2788_v57 }
  0xeb   :  { %1984 = vmatprep.subr.bf16.mxu1 %v2793_v58 }
  0xec   :  { %2012 = vmatpush1.bf16.msra.mxu0 %v2821_v11  ;;  %v2808_v11 = vld [vmem:[#allocation7 + $0x200] ss:$12 sps:$4 sm:$0xff]  }
  0xed   :  { %2013 = vmatprep.subr.bf16.mxu0 %v2827_v13  ;;  %v3021_v13 = vsub.s32 2, %v277_v24 }
  0xee   :  { %1985 = vmatpush2.bf16.msra.mxu1 %v2791_v52 }
  0xef   :  { %1986 = vmatprep.subr.bf16.mxu1 %v2796_v59 }
  0xf0   :  { %2014 = vmatpush1.bf16.msra.mxu0 %v2825_v14  ;;  %v2812_v14 = vld [vmem:[#allocation7 + $0x1e8] ss:$12 sps:$4 sm:$0xff]  }
  0xf1   :  { %2476 = vmatprep.subr.bf16.mxu0 %v2829_v15  ;;  %v287_v15 = vrot.slane %v274_v28, %v3021_v13 }
  0xf2   :  { %1987 = vmatpush2.bf16.msra.mxu1 %v2794_v60 }
  0xf3   :  { %2513 = vmatprep.subr.bf16.mxu1 %v2916_v12 }
 0x12b   :  { %v1148_v20 = vpop.f32.mrf.mxu0 }
 0x12c   :  { %v1191_v16 = vpop.f32.mrf.mxu1  ;;  %v1149_v41 = vadd.f32 %v1148_v20, %v279_v34 }
 0x12d   :  { %v1150_v22 = vpop.f32.mrf.mxu0 }
 0x12e   :  { %v1193_v17 = vpop.f32.mrf.mxu1  ;;  %v1151_v39 = vadd.f32 %v1150_v22, %v283_v33  ;;  %v1192_v49 = vadd.f32 %v1191_v16, %v1149_v41  ;;  %v2830_v41 = vld [vmem:[#allocation7 + $0xb0] ss:$12 sps:$4 sm:$0xff]  }
 0x12f   :  { %v1152_v25 = vpop.f32.mrf.mxu0 }
 0x130   :  { %v1195_v18 = vpop.f32.mrf.mxu1  ;;  %v1153_v40 = vadd.f32 %v1152_v25, %v279_v34  ;;  %v1194_v47 = vadd.f32 %v1193_v17, %v1151_v39  ;;  %v2816_v17 = vld [vmem:[#allocation7 + $0x1d0] ss:$12 sps:$4 sm:$0xff]  }
 0x131   :  { %v1154_v30 = vpop.f32.mrf.mxu0 }
 0x132   :  { %v1197_v19 = vpop.f32.mrf.mxu1  ;;  %v1155_v44 = vadd.f32 %v1154_v30, %v283_v33  ;;  %v1196_v48 = vadd.f32 %v1195_v18, %v1153_v40 }
 0x134   :  { %v1198_v53 = vadd.f32 %v1197_v19, %v1155_v44  ;;  %v2832_v44 = vld [vmem:[#allocation7 + $0x98] ss:$12 sps:$4 sm:$0xff]  }
 0x14c   :  { %v2997_v7 = vpop.f32.mrf.mxu1 }
 0x14e   :  { %v2999_v23 = vpop.f32.mrf.mxu1 }
 0x14f   :  { %v2426_v16 = vadd.f32 %v2999_v23, %v2997_v7  ;;  %v2824_v7 = vld [vmem:[#allocation7 + $0x1a0] ss:$12 sps:$4 sm:$0xff]  }
 0x150   :  { %v3001_v26 = vpop.f32.mrf.mxu1 }
 0x151   :  { %v1321_v18 = vadd.f32 %v2426_v16, %v287_v15  ;;  %v2130_v16 = vld [vmem:[%s3057_s5] sm:$0x7] }
 0x152   :  { %v2428_v31 = vpop.f32.mrf.mxu1 }
 0x153   :  { %v2429_v19 = vadd.f32 %v2428_v31, %v3001_v26  ;;  %v2828_v31 = vld [vmem:[#allocation7 + $0x188] ss:$12 sps:$4 sm:$0xff]  }
 0x155   :  { %v1324_v25 = vadd.f32 %v2429_v19, %v287_v15 }
 0x16b   :  { %v1234_v32 = vpop.f32.mrf.mxu0 }
 0x16c   :  { %v1235_v56 = vadd.f32 %v1234_v32, %v1192_v49  ;;  %v2838_v49 = vld [vmem:[#allocation7 + $0x50] ss:$12 sps:$4 sm:$0xff]  }
 0x16d   :  { %v1236_v35 = vpop.f32.mrf.mxu0  ;;  %v2446_v36 = vpop.f32.mrf.mxu1 }
 0x16e   :  { %v1237_v54 = vadd.f32 %v1236_v35, %v1194_v47  ;;  %v2836_v47 = vld [vmem:[#allocation7 + $0x68] ss:$12 sps:$4 sm:$0xff]  }
 0x16f   :  { %v1238_v37 = vpop.f32.mrf.mxu0  ;;  %v2447_v38 = vpop.f32.mrf.mxu1 }
 0x170   :  { %v1239_v55 = vadd.f32 %v1238_v37, %v1196_v48  ;;  %v2448_v20 = vadd.f32 %v2447_v38, %v2446_v36  ;;  %v2837_v48 = vld [vmem:[#allocation7 + $0x110] ss:$12 sps:$4 sm:$0xff]  }
 0x171   :  { %v1240_v42 = vpop.f32.mrf.mxu0  ;;  %v2449_v43 = vpop.f32.mrf.mxu1 }
 0x172   :  { %v1241_v52 = vadd.f32 %v1240_v42, %v1198_v53  ;;  %v1362_v30 = vadd.f32 %v2448_v20, %v1321_v18  ;;  %v2841_v53 = vld [vmem:[#allocation7 + $0xe0] ss:$12 sps:$4 sm:$0xff]   ;;  %v2139_v18 = vrot.slane %v2130_v16, %v3003_v27 }
 0x173   :  { %v1277_v45 = vpop.f32.mrf.mxu0  ;;  %v2450_v46 = vpop.f32.mrf.mxu1 }
 0x174   :  { %v1278_v61 = vadd.f32 %v1277_v45, %v1235_v56  ;;  %v2451_v28 = vadd.f32 %v2450_v46, %v2449_v43  ;;  %v2831_v43 = vld [vmem:[#allocation7 + $0x158] ss:$12 sps:$4 sm:$0xff]   ;;  %v2833_v45 = vld [vmem:[#allocation7 + $0x140] ss:$12 sps:$4 sm:$0xff]   ;;  %v2844_v56 = vld [vmem:[#allocation7 + $0x8] ss:$12 sps:$4 sm:$0xff]  }
 0x175   :  { %v1279_v50 = vpop.f32.mrf.mxu0  ;;  %v3012_v51 = vpop.f32.mrf.mxu1  ;;  %v2834_v46 = vld [vmem:[#allocation7 + $0x80] ss:$12 sps:$4 sm:$0xff]  }
 0x176   :  { %v1280_v59 = vadd.f32 %v1279_v50, %v1237_v54  ;;  %v1450_v5 = vmax.f32 %v1278_v61, 0.0  ;;  %v1365_v35 = vadd.f32 %v2451_v28, %v1324_v25  ;;  %v2839_v50 = vld [vmem:[#allocation7 + $0xf8] ss:$12 sps:$4 sm:$0xff]   ;;  %v2842_v54 = vld [vmem:[#allocation7 + $0x20] ss:$12 sps:$4 sm:$0xff]   ;;  %v2135_v28 = vrot.slane %v2130_v16, %v3008_v29 }
 0x177   :  { %v1281_v57 = vpop.f32.mrf.mxu0  ;;  %v2511_v58 = vpop.f32.mrf.mxu1 }
 0x178   :  { %v1282_v60 = vadd.f32 %v1281_v57, %v1239_v55  ;;  %v1451_v3 = vmax.f32 %v1280_v59, 0.0  ;;  %v2843_v55 = vld [vmem:[#allocation7 + $0xc8] ss:$12 sps:$4 sm:$0xff]  }
 0x179   :  { %v1283_v62 = vpop.f32.mrf.mxu0  ;;  %v1446_v63 = vpop.f32.mrf.mxu1 }
 0x17a   :  { %v1284_v0 = vadd.f32 %v1283_v62, %v1241_v52  ;;  %v1453_v1 = vmax.f32 %v1282_v60, 0.0 }
 0x17b   :  { %v2512_v2 = vpop.f32.mrf.mxu1 }
 0x17c   :  { %v1454_v4 = vmax.f32 %v1284_v0, 0.0  ;;  %v3014_v9 = vpack.c.bf16 %v1453_v1, %v1450_v5  ;;  %v1555_v2 = vld [vmem:[%s3056_s4] sm:$0x7] }
 0x17d   :  { %v1560_v5 = vrot.slane %v1555_v2, %v3008_v29 }
 0x17e   :  { %v1457_v6 = vpack.c.bf16 %v1454_v4, %v1451_v3  ;;  %v1564_v3 = vrot.slane %v1555_v2, %v3003_v27 }
 0x180   :  { %1988 = vmatprep.mubr.bf16.mxu1 %v1457_v6 }
 0x181   :  { %1989 = vmatmul.mubr.bf16.vlgmr.msra.gmra.mxu1 %v3014_v9 }
 0x182   :  { %2514 = vmatpush3.bf16.msra.mxu1 %v2800_v8  ;;  %2529 = vmatprep.mubr.msk.bf16.mxu1 %vm2918_vm0, %v2916_v12 }
 0x183   :  { %2515 = vmatprep.subr.bf16.mxu1 %v2916_v12 }
 0x186   :  { %2516 = vmatpush3.bf16.msra.mxu1 %v2804_v10 }
 0x187   :  { %2517 = vmatprep.subr.bf16.mxu1 %v2916_v12 }
 0x18a   :  { %2518 = vmatpush3.bf16.msra.mxu1 %v2808_v11 }
 0x18b   :  { %2519 = vmatprep.subr.bf16.mxu1 %v2916_v12 }
 0x18e   :  { %2520 = vmatpush3.bf16.msra.mxu1 %v2812_v14 }
 0x18f   :  { %2521 = vmatprep.subr.bf16.mxu1 %v2916_v12 }
 0x192   :  { %2522 = vmatpush3.bf16.msra.mxu1 %v2816_v17  ;;  %v1568_v17 = vrot.slane %v1555_v2, %v3021_v13 }
 0x193   :  { %v2468_v22 = vpop.f32.mrf.mxu0  ;;  %2523 = vmatprep.subr.bf16.mxu1 %v2916_v12 }
 0x195   :  { %v2469_v24 = vpop.f32.mrf.mxu0 }
 0x196   :  { %v2470_v32 = vadd.f32 %v2469_v24, %v2468_v22  ;;  %2524 = vmatpush3.bf16.msra.mxu1 %v2820_v21 }
 0x197   :  { %v2471_v23 = vpop.f32.mrf.mxu0  ;;  %2525 = vmatprep.subr.bf16.mxu1 %v2916_v12 }
 0x198   :  { %v1403_v33 = vadd.f32 %v2470_v32, %v1362_v30 }
 0x199   :  { %v2472_v34 = vpop.f32.mrf.mxu0 }
 0x19a   :  { %v2473_v26 = vadd.f32 %v2472_v34, %v2471_v23  ;;  %2526 = vmatpush3.bf16.msra.mxu1 %v2824_v7  ;;  %v1444_v36 = vadd.f32 %v3012_v51, %v1403_v33  ;;  %v2840_v51 = vld [vmem:[#allocation7 + $0x38] ss:$12 sps:$4 sm:$0xff]   ;;  %v2143_v33 = vrot.slane %v2130_v16, %v3021_v13  ;;  %v2407_v13 = vld [vmem:[#allocation2] ss:$0 sm:$0xff] }
 0x19b   :  { %2527 = vmatprep.subr.bf16.mxu1 %v2916_v12  ;;  %v2835_v12 = vld [vmem:[#allocation7 + $0x128] ss:$12 sps:$4 sm:$0xff]  }
 0x19c   :  { %v1406_v37 = vadd.f32 %v2473_v26, %v1365_v35  ;;  %v1452_v39 = vmax.f32 %v1444_v36, 0.0 }
 0x19e   :  { %v1447_v38 = vadd.f32 %v1446_v63, %v1406_v37  ;;  %2528 = vmatpush3.bf16.msra.mxu1 %v2828_v31 }
 0x1a0   :  { %v1455_v40 = vmax.f32 %v1447_v38, 0.0 }
 0x1a2   :  { %v1458_v42 = vpack.c.bf16 %v1455_v40, %v1452_v39 }
 0x1a4   :  { %2032 = vmatmul.mubr.bf16.vlgmr.msra.gmra.mxu0 %v1458_v42  ;;  %2530 = vmatmul.mubr.bf16.vlgmr.msra.gmra.mxu1 %v1458_v42 }
 0x1a5   :  { %2477 = vmatpush3.bf16.msra.mxu0 %v2830_v41  ;;  %2074 = vmatprep.mubr.bf16.mxu0 %v1457_v6 }
 0x1a6   :  { %2478 = vmatprep.subr.bf16.mxu0 %v2831_v43 }
 0x1a9   :  { %2479 = vmatpush3.bf16.msra.mxu0 %v2832_v44 }
 0x1aa   :  { %2480 = vmatprep.subr.bf16.mxu0 %v2833_v45 }
 0x1ad   :  { %2481 = vmatpush3.bf16.msra.mxu0 %v2834_v46 }
 0x1ae   :  { %2482 = vmatprep.subr.bf16.mxu0 %v2835_v12 }
 0x1b1   :  { %2483 = vmatpush3.bf16.msra.mxu0 %v2836_v47 }
 0x1b2   :  { %2484 = vmatprep.subr.bf16.mxu0 %v2837_v48 }
 0x1b5   :  { %2485 = vmatpush3.bf16.msra.mxu0 %v2838_v49 }
 0x1b6   :  { %2486 = vmatprep.subr.bf16.mxu0 %v2839_v50 }
 0x1b9   :  { %2487 = vmatpush3.bf16.msra.mxu0 %v2840_v51 }
 0x1ba   :  { %2488 = vmatprep.subr.bf16.mxu0 %v2841_v53 }
 0x1bd   :  { %2489 = vmatpush3.bf16.msra.mxu0 %v2842_v54 }
 0x1be   :  { %2490 = vmatprep.subr.bf16.mxu0 %v2843_v55 }
 0x1c1   :  { %2491 = vmatpush3.bf16.msra.mxu0 %v2844_v56 }
 0x1c4   :  { %2075 = vmatmul.mubr.bf16.vlgmr.msra.gmra.mxu0 %v3014_v9 }
 0x241   :  { %v1990_v57 = vpop.f32.mrf.mxu1 }
 0x242   :  { %v1991_v9 = vadd.f32 %v1990_v57, %v1560_v5 }
 0x243   :  { %v1992_v58 = vpop.f32.mrf.mxu1 }
 0x244   :  { %v1993_v6 = vadd.f32 %v1992_v58, %v1564_v3 }
 0x245   :  { %v1994_v52 = vpop.f32.mrf.mxu1 }
 0x246   :  { %v1995_v20 = vadd.f32 %v1994_v52, %v1560_v5 }
 0x247   :  { %v1996_v59 = vpop.f32.mrf.mxu1 }
 0x248   :  { %v1997_v14 = vadd.f32 %v1996_v59, %v1564_v3 }
 0x264   :  { %v2117_v60 = vpop.f32.mrf.mxu1  ;;  %v2033_v0 = vpop.f32.mrf.mxu0 }
 0x265   :  { %v2034_v15 = vadd.f32 %v2033_v0, %v1991_v9 }
 0x266   :  { %v2531_v61 = vpop.f32.mrf.mxu1  ;;  %v2035_v1 = vpop.f32.mrf.mxu0 }
 0x267   :  { %v2036_v10 = vadd.f32 %v2035_v1, %v1993_v6  ;;  %v2124_v30 = vmax.f32 %v2034_v15, 0.0 }
 0x268   :  { %v2120_v62 = vpop.f32.mrf.mxu1  ;;  %v2037_v4 = vpop.f32.mrf.mxu0 }
 0x269   :  { %v2125_v21 = vmax.f32 %v2036_v10, 0.0  ;;  %v2038_v32 = vadd.f32 %v2037_v4, %v1995_v20  ;;  %v2147_v36 = vmul.f32 %v2135_v28, %v2124_v30 }
 0x26a   :  { %v2532_v63 = vpop.f32.mrf.mxu1  ;;  %v2039_v8 = vpop.f32.mrf.mxu0 }
 0x26b   :  { %v2040_v22 = vadd.f32 %v2039_v8, %v1997_v14  ;;  %v2148_v34 = vmul.f32 %v2139_v18, %v2125_v21  ;;  %v2127_v27 = vmax.f32 %v2038_v32, 0.0 }
 0x26d   :  { %v2128_v35 = vmax.f32 %v2040_v22, 0.0  ;;  %v2153_v42 = vadd.f32 %v2148_v34, %v2147_v36  ;;  %v2150_v43 = vmul.f32 %v2135_v28, %v2127_v27 }
 0x26f   :  { %v2151_v39 = vmul.f32 %v2139_v18, %v2128_v35 }
 0x271   :  { %v2157_v46 = vadd.f32 %v2151_v39, %v2150_v43 }
 0x284   :  { %v2492_v11 = vpop.f32.mrf.mxu0 }
 0x286   :  { %v2493_v19 = vpop.f32.mrf.mxu0 }
 0x287   :  { %v2494_v24 = vadd.f32 %v2493_v19, %v2492_v11 }
 0x288   :  { %v2495_v25 = vpop.f32.mrf.mxu0 }
 0x289   :  { %v2077_v7 = vadd.f32 %v2494_v24, %v1568_v17 }
 0x28a   :  { %v2496_v23 = vpop.f32.mrf.mxu0 }
 0x28b   :  { %v2497_v26 = vadd.f32 %v2496_v23, %v2495_v25  ;;  %v2118_v31 = vadd.f32 %v2117_v60, %v2077_v7 }
 0x28d   :  { %v2080_v37 = vadd.f32 %v2497_v26, %v1568_v17  ;;  %v2126_v38 = vmax.f32 %v2118_v31, 0.0 }
 0x28f   :  { %v2121_v40 = vadd.f32 %v2120_v62, %v2080_v37  ;;  %v2149_v41 = vmul.f32 %v2143_v33, %v2126_v38 }
 0x291   :  { %v2129_v44 = vmax.f32 %v2121_v40, 0.0  ;;  %v2154_v29 = vadd.f32 %v2153_v42, %v2149_v41 }
 0x293   :  { %2155 = vadd.xlane.f32.xlu0 %v2154_v29  ;;  %v2152_v45 = vmul.f32 %v2143_v33, %v2129_v44 }
 0x295   :  { %v2158_v12 = vadd.f32 %v2157_v46, %v2152_v45 }
 0x297   :  { %2159 = vadd.xlane.f32.xlu0 %v2158_v12 }
 0x31c   :  { %v2156_v47 = vpop.xlane.xlu0 %2155 }
 0x31d   :  { %v2168_v48 = vadd.f32 %v2407_v13, %v2156_v47 }
 0x31f   :  { %2171 = vst.msk [vmem:[%s3059_s7] sm:$0xff] %vm2170_vm2, %v2168_v48 }
 0x320   :  { %v2160_v49 = vpop.xlane.xlu0 %2159 }
 0x321   :  { %v2169_v50 = vadd.f32 %v2407_v13, %v2160_v49 }
 0x323   :  { %2172 = vst.msk [vmem:[%s3059_s7 + $0x8] sm:$0xff] %vm2170_vm2, %v2169_v50 }
 0x324   :  { %2177 = vsyncpa [#allocation4], 1 }
 0x325   :  { %2178 = vsyncpa [#allocation6], 1 }

</bundles_post_ra>
